<compile_context>
chip_gen: v7x
topology: tpu7x:2x2x1
jax: 0.10.0
libtpu: 0.0.40
codegen_flags: <defaults>
</compile_context>

<pallas_src>
import jax
import jax.numpy as jnp
from jax import lax
from jax.experimental import pallas as pl
from jax.experimental.pallas import tpu as pltpu

EPS = 1e-12  # F.normalize eps


def _round_up(x, m):
    return (x + m - 1) // m * m


# -----------------------------------------------------------------------------
# Encoder kernel: per grid step, a (TN, HW, C+1) bf16 tile of images ->
#   bf16 matmul with (C+1, D_pad) (bias folded in) -> f32 ReLU ->
#   mean over HW -> (TN, D_pad) f32
# -----------------------------------------------------------------------------
def _encoder_kernel(x_ref, w_ref, o_ref):
    # Minor-dim contraction over C+1; free dims TN*HW form one large-M matmul.
    h = lax.dot_general(
        x_ref[...], w_ref[...], (((2,), (0,)), ((), ())),
        preferred_element_type=jnp.float32,
    )                                                # (TN, HW, D_pad) f32
    h = jnp.maximum(h, 0.0)                          # bias already in matmul
    o_ref[...] = jnp.mean(h, axis=1)                 # GAP over HW -> (TN, D_pad)


def encode(x_nchw, w_aug, *, tile_cap=128):
    """x_nchw: (N, C, H, W) f32; w_aug: (C+1, D_pad) bf16 (last row = bias)."""
    N, C, H, W = x_nchw.shape
    HW = H * W
    Ca, D_pad = w_aug.shape                          # Ca = C + 1

    # One transpose to channels-last, fused cast to bf16 (halves the HBM write
    # of this copy and halves the kernel's x DMA).
    x = jnp.transpose(x_nchw, (0, 2, 3, 1)).reshape(N, HW, C).astype(jnp.bfloat16)

    # Tile: large enough to amortize ~0.35 us/grid-step overhead, small enough
    # that h = tile_n*HW*D_pad*4 B (+ double-buffered x/out) fits every chip's
    # default scoped VMEM (v7x: 32 MiB of 64 MiB), and >=2 steps for megacore.
    tile_n = min(tile_cap, max(8, _round_up(-(-N // 2), 8)))
    n_pad = _round_up(N, tile_n)
    # tile_n=128, HW=64, D_pad=128: h = 4 MiB, x 2*80 KiB, out 2*64 KiB.
    # TODO(synk): for much larger HW, chunk HW with an 'arbitrary' reduction
    #   axis + (tile_n, D_pad) scratch accumulator to keep h off the VMEM limit.

    # Row pad (grid divisibility) and ones channel (bias fold) in ONE pad op.
    x = jnp.pad(
        x, ((0, n_pad - N), (0, 0), (0, 1)),
        constant_values=((0.0, 0.0), (0.0, 0.0), (0.0, 1.0)),
    )                                                # (n_pad, HW, C+1) bf16

    out = pl.pallas_call(
        _encoder_kernel,
        out_shape=jax.ShapeDtypeStruct((n_pad, D_pad), jnp.float32),
        grid=(n_pad // tile_n,),
        in_specs=[
            pl.BlockSpec((tile_n, HW, Ca), lambda i: (i, 0, 0)),
            pl.BlockSpec((Ca, D_pad), lambda i: (0, 0)),
        ],
        out_specs=pl.BlockSpec((tile_n, D_pad), lambda i: (i, 0)),
        compiler_params=pltpu.CompilerParams(
            dimension_semantics=("parallel",)),
    )(x, w_aug)
    return out[:N]


# -----------------------------------------------------------------------------
# Cosine-metric kernel, E_blk episodes per grid step.
#   q_ref : (E, Q, D)             query features (f32)
#   s_ref : (E*Wy8, S, D)         shot features, way axis rounded to 8 & folded
#   t_ref : (1,)                  temperature (SMEM scalar)
#   o_ref : (E, Q, Wy8)           logits (wrapper slices back to Wy)
# -----------------------------------------------------------------------------
def _cos_logits_kernel(q_ref, s_ref, t_ref, o_ref):
    e_blk, _, d = q_ref.shape
    wy8 = s_ref.shape[0] // e_blk
    t = t_ref[0]

    def l2norm(v):
        # F.normalize: v / max(||v||, eps)  ==  v * min(rsqrt(sumsq), 1/eps)
        ss = jnp.sum(v * v, axis=-1, keepdims=True)
        return v * jnp.minimum(lax.rsqrt(ss), 1.0 / EPS)   # rsqrt -> EUP

    s = l2norm(s_ref[...])                            # (E*Wy8, S, D)
    proto = l2norm(jnp.mean(s, axis=1))               # (E*Wy8, D)
    proto = proto.reshape(e_blk, wy8, d)              # (E, Wy8, D) — (8,128) tiles
    qn = l2norm(q_ref[...])                           # (E, Q, D)

    # Batched dot contracting the last (lane) dims of both operands — no .T.
    logits = lax.dot_general(
        qn.astype(jnp.bfloat16), proto.astype(jnp.bfloat16),
        dimension_numbers=(((2,), (2,)), ((0,), (0,))),
        preferred_element_type=jnp.float32,
    )                                                 # (E, Q, Wy8) f32
    o_ref[...] = t * logits


def compute_cos_logits(x_query, x_shot, temp, *, e_blk=32):
    """x_query: (ep, Q, D); x_shot: (ep, Wy, S, D); returns (ep, Q, Wy)."""
    ep, Q, D = x_query.shape
    _, Wy, S, _ = x_shot.shape

    wy8 = _round_up(Wy, 8)               # one sublane group, NOT 128 lanes
    e_blk = min(e_blk, ep)
    ep_pad = _round_up(ep, e_blk)

    q = x_query
    s = x_shot
    if ep_pad != ep:
        q = jnp.pad(q, ((0, ep_pad - ep), (0, 0), (0, 0)))
    if ep_pad != ep or wy8 != Wy:
        # Zero-padded ways/episodes stay zero through normalize/mean ->
        # zero logits (rsqrt(0)=inf is clamped by min(.,1e12) before *0).
        s = jnp.pad(s, ((0, ep_pad - ep), (0, wy8 - Wy), (0, 0), (0, 0)))
    s = s.reshape(ep_pad * wy8, S, D)    # fold episode into rows (free reshape)

    out = pl.pallas_call(
        _cos_logits_kernel,
        out_shape=jax.ShapeDtypeStruct((ep_pad, Q, wy8), jnp.float32),
        grid=(ep_pad // e_blk,),
        in_specs=[
            pl.BlockSpec((e_blk, Q, D), lambda e: (e, 0, 0)),
            pl.BlockSpec((e_blk * wy8, S, D), lambda e: (e, 0, 0)),
            pl.BlockSpec(memory_space=pltpu.MemorySpace.SMEM),
        ],
        out_specs=pl.BlockSpec((e_blk, Q, wy8), lambda e: (e, 0, 0)),
        compiler_params=pltpu.CompilerParams(
            dimension_semantics=("parallel",)),
    )(q, s, jnp.reshape(temp, (1,)).astype(jnp.float32))
    return out[:ep, :, :Wy]


# -----------------------------------------------------------------------------
# KLSANet forward (method='cos', use_BGF=False, temp learnable init=1.0)
# -----------------------------------------------------------------------------
def klsanet_forward(params, x_shot, x_query):
    shot_shape = x_shot.shape[:-3]        # (ep, way, shot)
    query_shape = x_query.shape[:-3]      # (ep, n_query)
    img_shape = x_shot.shape[-3:]

    C, D = params["w"].shape
    d_pad = _round_up(D, 128)             # lane-dense feature dim
    # Fold bias into the matmul: append bias row, pad feature dim to 128 lanes.
    w_aug = jnp.concatenate([params["w"], params["b"]], axis=0)        # (C+1, D)
    w_aug = jnp.pad(w_aug, ((0, 0), (0, d_pad - D))).astype(jnp.bfloat16)

    xs = x_shot.reshape((-1,) + img_shape)
    xq = x_query.reshape((-1,) + img_shape)
    # No concat of shots+queries: two encoder calls skip a full HBM copy.
    feat_shot = encode(xs, w_aug).reshape(shot_shape + (d_pad,))
    feat_query = encode(xq, w_aug).reshape(query_shape + (d_pad,))

    # normalization + prototype mean + dot logits all happen inside the kernel
    return compute_cos_logits(feat_query, feat_shot, params["temp"])


# -----------------------------------------------------------------------------
# Pure-JAX reference (same bf16-matmul / f32-accumulate precision choices)
# -----------------------------------------------------------------------------
def reference_forward(params, x_shot, x_query):
    def enc(x):
        N, C, H, W = x.shape
        xt = jnp.transpose(x, (0, 2, 3, 1)).reshape(N, H * W, C)
        ones = jnp.ones((N, H * W, 1), xt.dtype)
        xa = jnp.concatenate([xt, ones], axis=-1).astype(jnp.bfloat16)
        w_aug = jnp.concatenate([params["w"], params["b"]], axis=0).astype(jnp.bfloat16)
        h = jnp.einsum("nhc,cd->nhd", xa, w_aug,
                       preferred_element_type=jnp.float32)
        h = jnp.maximum(h, 0.0)
        return jnp.mean(h, axis=1)

    def l2(v):
        ss = jnp.sum(v * v, axis=-1, keepdims=True)
        return v * jnp.minimum(lax.rsqrt(ss), 1.0 / EPS)

    shot_shape = x_shot.shape[:-3]
    query_shape = x_query.shape[:-3]
    img = x_shot.shape[-3:]
    xs = x_shot.reshape((-1,) + img)
    xq = x_query.reshape((-1,) + img)
    f = enc(jnp.concatenate([xs, xq], axis=0))
    fs = f[: xs.shape[0]].reshape(shot_shape + (-1,))
    fq = f[xs.shape[0]:].reshape(query_shape + (-1,))
    fq = l2(fq)                            # use_BGF=False path (idempotent re-norm)
    fs = l2(fs)
    proto = l2(jnp.mean(fs, axis=-2))
    logits = jnp.einsum(
        "eqd,ewd->eqw",
        fq.astype(jnp.bfloat16), proto.astype(jnp.bfloat16),
        preferred_element_type=jnp.float32)
    return logits * params["temp"]


if __name__ == "__main__":
    # small few-shot problem: 2 episodes, 3-way, 2-shot, 6 queries, 4x8x8 images
    ep, way, shot, n_query = 2, 3, 2, 6
    C, H, W = 4, 8, 8
    D = 32  # encoder output feature dim

    key = jax.random.PRNGKey(0)
    k1, k2, k3, k4 = jax.random.split(key, 4)

    params = {
        "w": jax.random.normal(k1, (C, D), jnp.float32) * 0.1,
        "b": jax.random.normal(k2, (1, D), jnp.float32) * 0.01,
        "temp": jnp.asarray(1.0, jnp.float32),  # nn.Parameter(torch.tensor(1.0))
    }

    x_shot = jax.random.normal(k3, (ep, way, shot, C, H, W), jnp.float32)
    x_query = jax.random.normal(k4, (ep, n_query, C, H, W), jnp.float32)

    logits = jax.block_until_ready(
        jax.jit(klsanet_forward)(params, x_shot, x_query))
    ref = jax.block_until_ready(reference_forward(params, x_shot, x_query))

    assert logits.shape == (ep, n_query, way), logits.shape
    assert jnp.allclose(logits, ref, atol=5e-3, rtol=5e-3), (
        float(jnp.max(jnp.abs(logits - ref)))
    )
    print("KERNEL_OK")
</pallas_src>

<mosaic_0001>
module attributes {stable_mosaic.version = 11 : i64} {
  func.func @_encoder_kernel(%arg0: i32, %arg1: memref<8x64x5xbf16, #tpu.memory_space<vmem>>, %arg2: memref<5x128xbf16, #tpu.memory_space<vmem>>, %arg3: memref<8x128xf32, #tpu.memory_space<vmem>>) attributes {dimension_semantics = [#tpu.dimension_semantics<parallel>], iteration_bounds = array<i64: 2>, scalar_prefetch = 0 : i64, scratch_operands = 0 : i64, tpu.core_type = #tpu.core_type<tc>, window_params = [{transform_indices = @transform_0, window_bounds = array<i64: 8, 64, 5>}, {pipeline_mode = #tpu.pipeline_mode<synchronous>, transform_indices = @transform_1, window_bounds = array<i64: 5, 128>}, {transform_indices = @transform_2, window_bounds = array<i64: 8, 128>}]} {
    %c0 = arith.constant 0 : index
    %c0_0 = arith.constant 0 : index
    %c0_1 = arith.constant 0 : index
    %0 = vector.load %arg1[%c0, %c0_0, %c0_1] : memref<8x64x5xbf16, #tpu.memory_space<vmem>>, vector<8x64x5xbf16>
    %c0_2 = arith.constant 0 : index
    %c0_3 = arith.constant 0 : index
    %1 = vector.load %arg2[%c0_2, %c0_3] : memref<5x128xbf16, #tpu.memory_space<vmem>>, vector<5x128xbf16>
    %cst = arith.constant dense<0.000000e+00> : vector<8x64x128xf32>
    %2 = tpu.matmul %0, %1, %cst {dimension_numbers = #tpu.dot_dimension_numbers<[2], [0], [0, 1], [1], [0, 0, 0, 1, 1, 1], [], []>} : vector<8x64x5xbf16>, vector<5x128xbf16>, vector<8x64x128xf32> -> vector<8x64x128xf32>
    %cst_4 = arith.constant 0.000000e+00 : f32
    %3 = vector.broadcast %cst_4 : f32 to vector<8x64x128xf32>
    %4 = arith.maximumf %2, %3 : vector<8x64x128xf32>
    %cst_5 = arith.constant dense<0.000000e+00> : vector<8x128xf32>
    %5 = vector.multi_reduction <add>, %4, %cst_5 [1] : vector<8x64x128xf32> to vector<8x128xf32>
    %cst_6 = arith.constant 6.400000e+01 : f32
    %6 = vector.broadcast %cst_6 : f32 to vector<8x128xf32>
    %7 = arith.divf %5, %6 : vector<8x128xf32>
    %c0_7 = arith.constant 0 : index
    %c0_8 = arith.constant 0 : index
    %8 = vector.load %arg3[%c0_7, %c0_8] : memref<8x128xf32, #tpu.memory_space<vmem>>, vector<8x128xf32>
    tpu.vector_store %arg3[%c0_7, %c0_8], %7 {strides = array<i32>} : memref<8x128xf32, #tpu.memory_space<vmem>>, vector<8x128xf32>,
    return
  }
  func.func @transform_0(%arg0: i32) -> (i32, i32, i32) {
    %c0_i32 = arith.constant 0 : i32
    %c0_i32_0 = arith.constant 0 : i32
    %c0_i32_1 = arith.constant 0 : i32
    return %arg0, %c0_i32, %c0_i32_0 : i32, i32, i32
  }
  func.func @transform_1(%arg0: i32) -> (i32, i32) {
    %c0_i32 = arith.constant 0 : i32
    %c0_i32_0 = arith.constant 0 : i32
    %c0_i32_1 = arith.constant 0 : i32
    return %c0_i32, %c0_i32_0 : i32, i32
  }
  func.func @transform_2(%arg0: i32) -> (i32, i32) {
    %c0_i32 = arith.constant 0 : i32
    %c0_i32_0 = arith.constant 0 : i32
    return %arg0, %c0_i32 : i32, i32
  }
}

module attributes {stable_mosaic.version = 11 : i64} {
  func.func @_cos_logits_kernel(%arg0: i32, %arg1: memref<2x6x128xf32, #tpu.memory_space<vmem>>, %arg2: memref<16x2x128xf32, #tpu.memory_space<vmem>>, %arg3: memref<1xf32, #tpu.memory_space<smem>>, %arg4: memref<2x6x8xf32, #tpu.memory_space<vmem>>) attributes {dimension_semantics = [#tpu.dimension_semantics<parallel>], iteration_bounds = array<i64: 1>, scalar_prefetch = 0 : i64, scratch_operands = 0 : i64, tpu.core_type = #tpu.core_type<tc>, window_params = [{transform_indices = @transform_0, window_bounds = array<i64: 2, 6, 128>}, {transform_indices = @transform_1, window_bounds = array<i64: 16, 2, 128>}, {transform_indices = @transform_2, window_bounds = array<i64: 1>}, {transform_indices = @transform_3, window_bounds = array<i64: 2, 6, 8>}]} {
    %c0 = arith.constant 0 : index
    %0 = memref.load %arg3[%c0] : memref<1xf32, #tpu.memory_space<smem>>
    %c0_0 = arith.constant 0 : index
    %c0_1 = arith.constant 0 : index
    %c0_2 = arith.constant 0 : index
    %1 = vector.load %arg2[%c0_0, %c0_1, %c0_2] : memref<16x2x128xf32, #tpu.memory_space<vmem>>, vector<16x2x128xf32>
    %2 = arith.mulf %1, %1 : vector<16x2x128xf32>
    %cst = arith.constant dense<0.000000e+00> : vector<16x2xf32>
    %3 = vector.multi_reduction <add>, %2, %cst [2] : vector<16x2x128xf32> to vector<16x2xf32>
    %4 = vector.shape_cast %3 : vector<16x2xf32> to vector<16x2x1xf32>
    %5 = math.rsqrt %4 : vector<16x2x1xf32>
    %cst_3 = arith.constant 9.99999995E+11 : f32
    %6 = vector.broadcast %cst_3 : f32 to vector<16x2x1xf32>
    %7 = arith.minimumf %5, %6 : vector<16x2x1xf32>
    %8 = vector.broadcast %7 : vector<16x2x1xf32> to vector<16x2x128xf32>
    %9 = arith.mulf %1, %8 : vector<16x2x128xf32>
    %cst_4 = arith.constant dense<0.000000e+00> : vector<16x128xf32>
    %10 = vector.multi_reduction <add>, %9, %cst_4 [1] : vector<16x2x128xf32> to vector<16x128xf32>
    %cst_5 = arith.constant 2.000000e+00 : f32
    %11 = vector.broadcast %cst_5 : f32 to vector<16x128xf32>
    %12 = arith.divf %10, %11 : vector<16x128xf32>
    %13 = arith.mulf %12, %12 : vector<16x128xf32>
    %cst_6 = arith.constant dense<0.000000e+00> : vector<16xf32>
    %14 = vector.multi_reduction <add>, %13, %cst_6 [1] : vector<16x128xf32> to vector<16xf32>
    %15 = vector.shape_cast %14 : vector<16xf32> to vector<16x1xf32>
    %16 = math.rsqrt %15 : vector<16x1xf32>
    %cst_7 = arith.constant 9.99999995E+11 : f32
    %17 = vector.broadcast %cst_7 : f32 to vector<16x1xf32>
    %18 = arith.minimumf %16, %17 : vector<16x1xf32>
    %19 = vector.broadcast %18 : vector<16x1xf32> to vector<16x128xf32>
    %20 = arith.mulf %12, %19 : vector<16x128xf32>
    %21 = vector.shape_cast %20 : vector<16x128xf32> to vector<2x8x128xf32>
    %c0_8 = arith.constant 0 : index
    %c0_9 = arith.constant 0 : index
    %c0_10 = arith.constant 0 : index
    %22 = vector.load %arg1[%c0_8, %c0_9, %c0_10] : memref<2x6x128xf32, #tpu.memory_space<vmem>>, vector<2x6x128xf32>
    %23 = arith.mulf %22, %22 : vector<2x6x128xf32>
    %cst_11 = arith.constant dense<0.000000e+00> : vector<2x6xf32>
    %24 = vector.multi_reduction <add>, %23, %cst_11 [2] : vector<2x6x128xf32> to vector<2x6xf32>
    %25 = vector.shape_cast %24 : vector<2x6xf32> to vector<2x6x1xf32>
    %26 = math.rsqrt %25 : vector<2x6x1xf32>
    %cst_12 = arith.constant 9.99999995E+11 : f32
    %27 = vector.broadcast %cst_12 : f32 to vector<2x6x1xf32>
    %28 = arith.minimumf %26, %27 : vector<2x6x1xf32>
    %29 = vector.broadcast %28 : vector<2x6x1xf32> to vector<2x6x128xf32>
    %30 = arith.mulf %22, %29 : vector<2x6x128xf32>
    %31 = arith.truncf %30 : vector<2x6x128xf32> to vector<2x6x128xbf16>
    %32 = arith.truncf %21 : vector<2x8x128xf32> to vector<2x8x128xbf16>
    %cst_13 = arith.constant dense<0.000000e+00> : vector<2x6x8xf32>
    %33 = tpu.matmul %31, %32, %cst_13 {dimension_numbers = #tpu.dot_dimension_numbers<[2], [2], [1], [1], [0, 0, 0, 1, 1, 1], [0], [0]>} : vector<2x6x128xbf16>, vector<2x8x128xbf16>, vector<2x6x8xf32> -> vector<2x6x8xf32>
    %34 = vector.broadcast %0 : f32 to vector<2x6x8xf32>
    %35 = arith.mulf %34, %33 : vector<2x6x8xf32>
    %c0_14 = arith.constant 0 : index
    %c0_15 = arith.constant 0 : index
    %c0_16 = arith.constant 0 : index
    %36 = vector.load %arg4[%c0_14, %c0_15, %c0_16] : memref<2x6x8xf32, #tpu.memory_space<vmem>>, vector<2x6x8xf32>
    tpu.vector_store %arg4[%c0_14, %c0_15, %c0_16], %35 {strides = array<i32>} : memref<2x6x8xf32, #tpu.memory_space<vmem>>, vector<2x6x8xf32>,
    return
  }
  func.func @transform_0(%arg0: i32) -> (i32, i32, i32) {
    %c0_i32 = arith.constant 0 : i32
    %c0_i32_0 = arith.constant 0 : i32
    %c0_i32_1 = arith.constant 0 : i32
    return %arg0, %c0_i32, %c0_i32_0 : i32, i32, i32
  }
  func.func @transform_1(%arg0: i32) -> (i32, i32, i32) {
    %c0_i32 = arith.constant 0 : i32
    %c0_i32_0 = arith.constant 0 : i32
    %c0_i32_1 = arith.constant 0 : i32
    return %arg0, %c0_i32, %c0_i32_0 : i32, i32, i32
  }
  func.func @transform_2(%arg0: i32) -> i32 {
    %c0_i32 = arith.constant 0 : i32
    %c0_i32_0 = arith.constant 0 : i32
    return %c0_i32 : i32
  }
  func.func @transform_3(%arg0: i32) -> (i32, i32, i32) {
    %c0_i32 = arith.constant 0 : i32
    %c0_i32_0 = arith.constant 0 : i32
    %c0_i32_1 = arith.constant 0 : i32
    return %arg0, %c0_i32, %c0_i32_0 : i32, i32, i32
  }
}

</mosaic_0001>

<bundles_post_ra>
// kernel: klsanet_forward.4
= control target key start
LH: loop header
LB: loop body
LE: loop exit
PB: predicated region body
PF: predicated region fallthrough
CT: control target
= control target key end

     0   :  { %s1262_s9 = smov 0   ;;  %s1361_s0 = inlined_call_operand.vmem [shape: bf16[16,64,5], index: 0, kind: input, shape index: {}]   ;;  %s1362_s1 = inlined_call_operand.vmem [shape: bf16[5,128], index: 1, kind: input, shape index: {}]   ;;  %s1363_s2 = inlined_call_operand.vmem [shape: f32[16,128], index: 2, kind: output, shape index: {}]  }
   0x1 LB: > { %s1268_s10 = sadd.s32 4294967295, %s1244_s9   ;;  %p1024_p0 = scmp.ge.s32.totalorder %s1244_s9, 1  ;;  %s1244_s9 = sphi %s1262_s9, %s12_s9  }
   0x2   : > { %p114_p1 = scmp.lt.s32.totalorder %s1244_s9, 3 }
   0x4   : > { %p115_p2 = pnand %p1024_p0, %p114_p1 }
   0x5   : > { %v212_v0 = vld [vmem:[%s1362_s1] sm:$0x7] (!%p115_p2)  ;;  %vm470_vm0 = vcmask (!%p115_p2), 1041408   ;;  %vm471_vm1 = vcmask (!%p115_p2), 1042432   ;;  %s1025_s13 = sshll.u32 (!%p115_p2), %s1268_s10, 3  ;;  %v1246_v1 = vmov (!%p115_p2), 65535  }
   0x6   : > { %118 = sbr.rel (%p115_p2) target bundleno = 317 (0x13d), region = 28  ;;  %v472_v2 = vsel (!%p115_p2), %vm470_vm0, 4294967295, %v1246_v1  ;;  %p137_p3 = scmp.lt.s32.totalorder (!%p115_p2), %s1025_s13, 15  ;;  %vm373_vm2 = vcmask (!%p115_p2), 39936   ;;  %vm951_vm3 = vcmask (!%p115_p2), 1041409   ;;  %vm953_vm4 = vcmask (!%p115_p2), 1042434  }
   0x7   : > { %v473_v3 = vsel (!%p115_p2), %vm471_vm1, %v472_v2, 0  ;;  %p143_p4 = scmp.lt.s32.totalorder (!%p115_p2), %s1268_s10, 1  ;;  %vm955_vm5 = vcmask (!%p115_p2), 1043459   ;;  %vm957_vm6 = vcmask (!%p115_p2), 1044484   ;;  %vm959_vm7 = vcmask (!%p115_p2), 1045509  }
   0x8   : > { %v475_v4 = vand.u32 (!%p115_p2), %v473_v3, %v212_v0  ;;  %vm961_vm8 = vcmask (!%p115_p2), 1046534   ;;  %vm963_vm9 = vcmask (!%p115_p2), 1047559  }
   0xa   : > { %1129 = vmatprep.subr.bf16.mxu0 (!%p115_p2), %v475_v4  ;;  %1195 = vmatprep.subr.bf16.mxu1 (!%p115_p2), %v475_v4 }
   0xb   : > { %1130 = vmatpush3.bf16.msra.mxu0 (!%p115_p2), %v475_v4  ;;  %1196 = vmatpush3.bf16.msra.mxu1 (!%p115_p2), %v475_v4 }
   0xd   : > { %s1365_s13 = smov (!%p137_p3, %s1025_s13), 15  ;;  %s1367_s10 = smov (!%p143_p4, %s1268_s10), 1 }
   0xe   : > { %s1095_s14 = sshll.u32 %s1365_s13, 5  ;;  %s1028_s18 = sshll.u32 %s1367_s10, 3 }
   0xf   : > { %s1279_s17 = scalar_lea.vmem %s1361_s0, %s1095_s14  ;;  %s146_s21 = scalar_lea.vmem %s1363_s2, %s1028_s18 }
  0x10   : > { %v1206_v5 = vld [vmem:[%s1279_s17] sm:$0xff]   ;;  %v1208_v7 = vld [vmem:[%s1279_s17 + $0x8] sm:$0xff]   ;;  %v1210_v9 = vld [vmem:[%s1279_s17 + $0x10] sm:$0xff]  }
  0x11   : > { %v1207_v6 = vld [vmem:[%s1279_s17 + $0x80] sm:$0xff]   ;;  %1131 = vmatprep.mubr.msk.bf16.mxu0 %vm373_vm2, %v1206_v5  ;;  %v1209_v8 = vld [vmem:[%s1279_s17 + $0x88] sm:$0xff]   ;;  %v1211_v10 = vld [vmem:[%s1279_s17 + $0x90] sm:$0xff]  }
  0x12   : > { %1163 = vmatprep.mubr.msk.bf16.mxu1 %vm373_vm2, %v1207_v6  ;;  %1132 = vmatmul.mubr.msk.bf16.vlgmr.msra.gmra.mrb[0].mxu0 %vm373_vm2, %v1208_v7  ;;  %v1212_v11 = vld [vmem:[%s1279_s17 + $0x18] sm:$0xff]   ;;  %v1214_v13 = vld [vmem:[%s1279_s17 + $0x20] sm:$0xff]   ;;  %v1216_v15 = vld [vmem:[%s1279_s17 + $0x28] sm:$0xff]  }
  0x13   : > { %1164 = vmatmul.mubr.msk.bf16.vlgmr.msra.gmra.mrb[0].mxu1 %vm373_vm2, %v1209_v8  ;;  %1135 = vmatprep.mubr.msk.bf16.mxu0 %vm373_vm2, %v1210_v9  ;;  %v1213_v12 = vld [vmem:[%s1279_s17 + $0x98] sm:$0xff]   ;;  %v1215_v14 = vld [vmem:[%s1279_s17 + $0xa0] sm:$0xff]   ;;  %v1217_v16 = vld [vmem:[%s1279_s17 + $0xa8] sm:$0xff]  }
  0x14   : > { %1167 = vmatprep.mubr.msk.bf16.mxu1 %vm373_vm2, %v1211_v10  ;;  %v1218_v17 = vld [vmem:[%s1279_s17 + $0x30] sm:$0xff]   ;;  %v1220_v19 = vld [vmem:[%s1279_s17 + $0x38] sm:$0xff]   ;;  %v1222_v21 = vld [vmem:[%s1279_s17 + $0x40] sm:$0xff]  }
  0x15   : > { %v1219_v18 = vld [vmem:[%s1279_s17 + $0xb0] sm:$0xff]   ;;  %v1221_v20 = vld [vmem:[%s1279_s17 + $0xb8] sm:$0xff]   ;;  %v1223_v22 = vld [vmem:[%s1279_s17 + $0xc0] sm:$0xff]  }
  0x16   : > { %v1224_v23 = vld [vmem:[%s1279_s17 + $0x48] sm:$0xff]   ;;  %v1226_v25 = vld [vmem:[%s1279_s17 + $0x50] sm:$0xff]   ;;  %v1228_v27 = vld [vmem:[%s1279_s17 + $0x58] sm:$0xff]  }
  0x17   : > { %v1225_v24 = vld [vmem:[%s1279_s17 + $0xc8] sm:$0xff]   ;;  %v1227_v26 = vld [vmem:[%s1279_s17 + $0xd0] sm:$0xff]   ;;  %v1229_v28 = vld [vmem:[%s1279_s17 + $0xd8] sm:$0xff]  }
  0x18   : > { %v1230_v29 = vld [vmem:[%s1279_s17 + $0x60] sm:$0xff]   ;;  %v1232_v31 = vld [vmem:[%s1279_s17 + $0x68] sm:$0xff]   ;;  %v1234_v33 = vld [vmem:[%s1279_s17 + $0x70] sm:$0xff]  }
  0x19   : > { %v1231_v30 = vld [vmem:[%s1279_s17 + $0xe0] sm:$0xff]   ;;  %v1233_v32 = vld [vmem:[%s1279_s17 + $0xe8] sm:$0xff]   ;;  %v1235_v34 = vld [vmem:[%s1279_s17 + $0xf0] sm:$0xff]  }
  0x1a   : > { %1136 = vmatmul.mubr.msk.bf16.gmra.mrb[4].mxu0 %vm373_vm2, %v1212_v11  ;;  %v1236_v35 = vld [vmem:[%s1279_s17 + $0x78] sm:$0xff]  }
  0x1b   : > { %1168 = vmatmul.mubr.msk.bf16.gmra.mrb[4].mxu1 %vm373_vm2, %v1213_v12  ;;  %1139 = vmatprep.mubr.msk.bf16.mxu0 %vm373_vm2, %v1214_v13  ;;  %v1237_v36 = vld [vmem:[%s1279_s17 + $0xf8] sm:$0xff]  }
  0x1c   : > { %1171 = vmatprep.mubr.msk.bf16.mxu1 %vm373_vm2, %v1215_v14 }
  0x22   : > { %1140 = vmatmul.mubr.msk.bf16.gmra.mrb[8].mxu0 %vm373_vm2, %v1216_v15 }
  0x23   : > { %1172 = vmatmul.mubr.msk.bf16.gmra.mrb[8].mxu1 %vm373_vm2, %v1217_v16  ;;  %1143 = vmatprep.mubr.msk.bf16.mxu0 %vm373_vm2, %v1218_v17 }
  0x24   : > { %1175 = vmatprep.mubr.msk.bf16.mxu1 %vm373_vm2, %v1219_v18 }
  0x2a   : > { %1144 = vmatmul.mubr.msk.bf16.gmra.mrb[12].mxu0 %vm373_vm2, %v1220_v19 }
  0x2b   : > { %1176 = vmatmul.mubr.msk.bf16.gmra.mrb[12].mxu1 %vm373_vm2, %v1221_v20  ;;  %1147 = vmatprep.mubr.msk.bf16.mxu0 %vm373_vm2, %v1222_v21 }
  0x2c   : > { %1179 = vmatprep.mubr.msk.bf16.mxu1 %vm373_vm2, %v1223_v22 }
  0x32   : > { %1148 = vmatmul.mubr.msk.bf16.gmra.mrb[16].mxu0 %vm373_vm2, %v1224_v23 }
  0x33   : > { %1180 = vmatmul.mubr.msk.bf16.gmra.mrb[16].mxu1 %vm373_vm2, %v1225_v24  ;;  %1151 = vmatprep.mubr.msk.bf16.mxu0 %vm373_vm2, %v1226_v25 }
  0x34   : > { %1183 = vmatprep.mubr.msk.bf16.mxu1 %vm373_vm2, %v1227_v26 }
  0x3a   : > { %1152 = vmatmul.mubr.msk.bf16.gmra.mrb[20].mxu0 %vm373_vm2, %v1228_v27 }
  0x3b   : > { %1184 = vmatmul.mubr.msk.bf16.gmra.mrb[20].mxu1 %vm373_vm2, %v1229_v28  ;;  %1155 = vmatprep.mubr.msk.bf16.mxu0 %vm373_vm2, %v1230_v29 }
  0x3c   : > { %1187 = vmatprep.mubr.msk.bf16.mxu1 %vm373_vm2, %v1231_v30 }
  0x42   : > { %1156 = vmatmul.mubr.msk.bf16.gmra.mrb[24].mxu0 %vm373_vm2, %v1232_v31 }
  0x43   : > { %1188 = vmatmul.mubr.msk.bf16.gmra.mrb[24].mxu1 %vm373_vm2, %v1233_v32  ;;  %1159 = vmatprep.mubr.msk.bf16.mxu0 %vm373_vm2, %v1234_v33 }
  0x44   : > { %1191 = vmatprep.mubr.msk.bf16.mxu1 %vm373_vm2, %v1235_v34 }
  0x4a   : > { %1160 = vmatmul.mubr.msk.bf16.gmra.mrb[28].mxu0 %vm373_vm2, %v1236_v35 }
  0x4b   : > { %1192 = vmatmul.mubr.msk.bf16.gmra.mrb[28].mxu1 %vm373_vm2, %v1237_v36 }
  0xe5   : > { %v1133_v37 = vpop.f32.mrb[0].mxu0 }
  0xe6   : > { %v1165_v38 = vpop.f32.mrb[0].mxu1  ;;  %v511_v39 = vpop.f32.mrb[1].mxu0  ;;  %v768_v50 = vmax.f32 %v1133_v37, 0.0 }
  0xe7   : > { %v639_v40 = vpop.f32.mrb[1].mxu1  ;;  %v1134_v41 = vpop.f32.mrb[2].mxu0  ;;  %v766_v45 = vmax.f32 %v511_v39, 0.0  ;;  %v800_v48 = vmax.f32 %v1165_v38, 0.0 }
  0xe8   : > { %v798_v42 = vmax.f32 %v639_v40, 0.0  ;;  %v1166_v43 = vpop.f32.mrb[2].mxu1  ;;  %v514_v44 = vpop.f32.mrb[3].mxu0  ;;  %v769_v53 = vmax.f32 %v1134_v41, 0.0 }
  0xe9   : > { %v767_v46 = vmax.f32 %v514_v44, 0.0  ;;  %v642_v47 = vpop.f32.mrb[3].mxu1  ;;  %v801_v56 = vmax.f32 %v1166_v43, 0.0 }
  0xea   : > { %v799_v49 = vmax.f32 %v642_v47, 0.0 }
  0xeb   : > { %v830_v51 = vadd.f32 %v767_v46, %v766_v45 }
  0xec   : > { %v882_v52 = vadd.f32 %v799_v49, %v798_v42 }
  0xed   : > { %v831_v54 = vadd.f32 %v830_v51, %v768_v50  ;;  %v1137_v55 = vpop.f32.mrb[4].mxu0 }
  0xee   : > { %v883_v57 = vadd.f32 %v882_v52, %v800_v48  ;;  %v1169_v58 = vpop.f32.mrb[4].mxu1  ;;  %v527_v59 = vpop.f32.mrb[5].mxu0  ;;  %v772_v10 = vmax.f32 %v1137_v55, 0.0 }
  0xef   : > { %v770_v60 = vmax.f32 %v527_v59, 0.0  ;;  %v832_v61 = vadd.f32 %v831_v54, %v769_v53  ;;  %v655_v62 = vpop.f32.mrb[5].mxu1  ;;  %v1138_v63 = vpop.f32.mrb[6].mxu0  ;;  %v804_v7 = vmax.f32 %v1169_v58, 0.0 }
  0xf0   : > { %v802_v0 = vmax.f32 %v655_v62, 0.0  ;;  %v884_v1 = vadd.f32 %v883_v57, %v801_v56  ;;  %v1170_v2 = vpop.f32.mrb[6].mxu1  ;;  %v530_v3 = vpop.f32.mrb[7].mxu0  ;;  %v773_v13 = vmax.f32 %v1138_v63, 0.0 }
  0xf1   : > { %v833_v4 = vadd.f32 %v832_v61, %v770_v60  ;;  %v771_v5 = vmax.f32 %v530_v3, 0.0  ;;  %v658_v6 = vpop.f32.mrb[7].mxu1  ;;  %v805_v16 = vmax.f32 %v1170_v2, 0.0 }
  0xf2   : > { %v885_v8 = vadd.f32 %v884_v1, %v802_v0  ;;  %v803_v9 = vmax.f32 %v658_v6, 0.0 }
  0xf3   : > { %v834_v11 = vadd.f32 %v833_v4, %v771_v5 }
  0xf4   : > { %v886_v12 = vadd.f32 %v885_v8, %v803_v9 }
  0xf5   : > { %v835_v14 = vadd.f32 %v834_v11, %v772_v10  ;;  %v1141_v15 = vpop.f32.mrb[8].mxu0 }
  0xf6   : > { %v887_v17 = vadd.f32 %v886_v12, %v804_v7  ;;  %v1173_v18 = vpop.f32.mrb[8].mxu1  ;;  %v543_v19 = vpop.f32.mrb[9].mxu0  ;;  %v776_v32 = vmax.f32 %v1141_v15, 0.0 }
  0xf7   : > { %v836_v20 = vadd.f32 %v835_v14, %v773_v13  ;;  %v671_v21 = vpop.f32.mrb[9].mxu1  ;;  %v1142_v22 = vpop.f32.mrb[10].mxu0  ;;  %v774_v27 = vmax.f32 %v543_v19, 0.0  ;;  %v808_v30 = vmax.f32 %v1173_v18, 0.0 }
  0xf8   : > { %v1345_v23 = vadd.f32 %v887_v17, %v805_v16  ;;  %v806_v24 = vmax.f32 %v671_v21, 0.0  ;;  %v1174_v25 = vpop.f32.mrb[10].mxu1  ;;  %v546_v26 = vpop.f32.mrb[11].mxu0  ;;  %v777_v36 = vmax.f32 %v1142_v22, 0.0 }
  0xf9   : > { %v775_v28 = vmax.f32 %v546_v26, 0.0  ;;  %v674_v29 = vpop.f32.mrb[11].mxu1  ;;  %v837_v35 = vrot.slane %v836_v20, 4  ;;  %v809_v39 = vmax.f32 %v1174_v25, 0.0 }
  0xfa   : > { %v807_v31 = vmax.f32 %v674_v29, 0.0 }
  0xfb   : > { %v843_v33 = vadd.f32 %v775_v28, %v774_v27  ;;  %v838_v51 = vadd.f32 %v837_v35, %v836_v20 }
  0xfc   : > { %v895_v34 = vadd.f32 %v807_v31, %v806_v24 }
  0xfd   : > { %v844_v37 = vadd.f32 %v843_v33, %v776_v32  ;;  %v1145_v38 = vpop.f32.mrb[12].mxu0  ;;  %v839_v61 = vrot.slane %v838_v51, 2 }
  0xfe   : > { %v896_v40 = vadd.f32 %v895_v34, %v808_v30  ;;  %v1177_v41 = vpop.f32.mrb[12].mxu1  ;;  %v559_v42 = vpop.f32.mrb[13].mxu0  ;;  %v780_v58 = vmax.f32 %v1145_v38, 0.0 }
  0xff   : > { %v778_v43 = vmax.f32 %v559_v42, 0.0  ;;  %v845_v44 = vadd.f32 %v844_v37, %v777_v36  ;;  %v687_v45 = vpop.f32.mrb[13].mxu1  ;;  %v1146_v46 = vpop.f32.mrb[14].mxu0  ;;  %v812_v55 = vmax.f32 %v1177_v41, 0.0  ;;  %v840_v12 = vadd.f32 %v839_v61, %v838_v51 }
 0x100   : > { %v810_v47 = vmax.f32 %v687_v45, 0.0  ;;  %v897_v48 = vadd.f32 %v896_v40, %v809_v39  ;;  %v1178_v49 = vpop.f32.mrb[14].mxu1  ;;  %v562_v50 = vpop.f32.mrb[15].mxu0  ;;  %v781_v62 = vmax.f32 %v1146_v46, 0.0 }
 0x101   : > { %v846_v52 = vadd.f32 %v845_v44, %v778_v43  ;;  %v779_v53 = vmax.f32 %v562_v50, 0.0  ;;  %v690_v54 = vpop.f32.mrb[15].mxu1  ;;  %v813_v1 = vmax.f32 %v1178_v49, 0.0  ;;  %v841_v24 = vrot.slane %v840_v12, 1 }
 0x102   : > { %v898_v56 = vadd.f32 %v897_v48, %v810_v47  ;;  %v811_v57 = vmax.f32 %v690_v54, 0.0 }
 0x103   : > { %v847_v59 = vadd.f32 %v846_v52, %v779_v53  ;;  %v842_v42 = vadd.f32 %v841_v24, %v840_v12 }
 0x104   : > { %v899_v60 = vadd.f32 %v898_v56, %v811_v57 }
 0x105   : > { %v848_v63 = vadd.f32 %v847_v59, %v780_v58  ;;  %v1149_v0 = vpop.f32.mrb[16].mxu0  ;;  %v935_v54 = vmul.f32 0.015625, %v842_v42 }
 0x106   : > { %v900_v2 = vadd.f32 %v899_v60, %v812_v55  ;;  %v1181_v3 = vpop.f32.mrb[16].mxu1  ;;  %v575_v4 = vpop.f32.mrb[17].mxu0  ;;  %v784_v20 = vmax.f32 %v1149_v0, 0.0 }
 0x107   : > { %v849_v5 = vadd.f32 %v848_v63, %v781_v62  ;;  %v703_v6 = vpop.f32.mrb[17].mxu1  ;;  %v1150_v7 = vpop.f32.mrb[18].mxu0  ;;  %v782_v14 = vmax.f32 %v575_v4, 0.0  ;;  %v816_v17 = vmax.f32 %v1181_v3, 0.0 }
 0x108   : > { %v1347_v8 = vadd.f32 %v900_v2, %v813_v1  ;;  %v814_v9 = vmax.f32 %v703_v6, 0.0  ;;  %v1182_v10 = vpop.f32.mrb[18].mxu1  ;;  %v578_v11 = vpop.f32.mrb[19].mxu0  ;;  %v785_v26 = vmax.f32 %v1150_v7, 0.0 }
 0x109   : > { %v850_v13 = vrot.slane %v849_v5, 4  ;;  %v783_v15 = vmax.f32 %v578_v11, 0.0  ;;  %v706_v16 = vpop.f32.mrb[19].mxu1  ;;  %v817_v29 = vmax.f32 %v1182_v10, 0.0 }
 0x10a   : > { %v815_v18 = vmax.f32 %v706_v16, 0.0 }
 0x10b   : > { %v851_v19 = vadd.f32 %v850_v13, %v849_v5  ;;  %v856_v21 = vadd.f32 %v783_v15, %v782_v14 }
 0x10c   : > { %v908_v22 = vadd.f32 %v815_v18, %v814_v9 }
 0x10d   : > { %v852_v25 = vrot.slane %v851_v19, 2  ;;  %v857_v27 = vadd.f32 %v856_v21, %v784_v20  ;;  %v1153_v28 = vpop.f32.mrb[20].mxu0 }
 0x10e   : > { %v909_v30 = vadd.f32 %v908_v22, %v816_v17  ;;  %v1185_v31 = vpop.f32.mrb[20].mxu1  ;;  %v591_v32 = vpop.f32.mrb[21].mxu0  ;;  %v788_v51 = vmax.f32 %v1153_v28, 0.0  ;;  %v889_v22 = vrot.slane %v1345_v23, 4  ;;  %v902_v28 = vrot.slane %v1347_v8, 4 }
 0x10f   : > { %v853_v33 = vadd.f32 %v852_v25, %v851_v19  ;;  %v786_v34 = vmax.f32 %v591_v32, 0.0  ;;  %v858_v35 = vadd.f32 %v857_v27, %v785_v26  ;;  %v719_v36 = vpop.f32.mrb[21].mxu1  ;;  %v1154_v37 = vpop.f32.mrb[22].mxu0  ;;  %v820_v47 = vmax.f32 %v1185_v31, 0.0 }
 0x110   : > { %v818_v38 = vmax.f32 %v719_v36, 0.0  ;;  %v910_v39 = vadd.f32 %v909_v30, %v817_v29  ;;  %v1186_v40 = vpop.f32.mrb[22].mxu1  ;;  %v594_v41 = vpop.f32.mrb[23].mxu0  ;;  %v789_v56 = vmax.f32 %v1154_v37, 0.0 }
 0x111   : > { %v854_v43 = vrot.slane %v853_v33, 1  ;;  %v859_v44 = vadd.f32 %v858_v35, %v786_v34  ;;  %v787_v45 = vmax.f32 %v594_v41, 0.0  ;;  %v722_v46 = vpop.f32.mrb[23].mxu1  ;;  %v821_v59 = vmax.f32 %v1186_v40, 0.0 }
 0x112   : > { %v911_v48 = vadd.f32 %v910_v39, %v818_v38  ;;  %v819_v49 = vmax.f32 %v722_v46, 0.0 }
 0x113   : > { %v855_v50 = vadd.f32 %v854_v43, %v853_v33  ;;  %v860_v52 = vadd.f32 %v859_v44, %v787_v45  ;;  %v890_v43 = vadd.f32 %v889_v22, %v1345_v23 }
 0x114   : > { %v912_v53 = vadd.f32 %v911_v48, %v819_v49 }
 0x115   : > { %v936_v55 = vmul.f32 0.015625, %v855_v50  ;;  %v861_v57 = vadd.f32 %v860_v52, %v788_v51  ;;  %v1157_v58 = vpop.f32.mrb[24].mxu0 }
 0x116   : > { %v913_v60 = vadd.f32 %v912_v53, %v820_v47  ;;  %v1189_v61 = vpop.f32.mrb[24].mxu1  ;;  %v607_v62 = vpop.f32.mrb[25].mxu0  ;;  %v792_v15 = vmax.f32 %v1157_v58, 0.0  ;;  %v903_v47 = vadd.f32 %v902_v28, %v1347_v8 }
 0x117   : > { %v952_v63 = vsel %vm951_vm3, %v936_v55, %v935_v54  ;;  %v862_v0 = vadd.f32 %v861_v57, %v789_v56  ;;  %v735_v1 = vpop.f32.mrb[25].mxu1  ;;  %v1158_v2 = vpop.f32.mrb[26].mxu0  ;;  %v790_v9 = vmax.f32 %v607_v62, 0.0  ;;  %v824_v12 = vmax.f32 %v1189_v61, 0.0 }
 0x118   : > { %v914_v3 = vadd.f32 %v913_v60, %v821_v59  ;;  %v822_v4 = vmax.f32 %v735_v1, 0.0  ;;  %v1190_v5 = vpop.f32.mrb[26].mxu1  ;;  %v610_v6 = vpop.f32.mrb[27].mxu0  ;;  %v793_v19 = vmax.f32 %v1158_v2, 0.0  ;;  %v891_v56 = vrot.slane %v890_v43, 2 }
 0x119   : > { %v863_v7 = vrot.slane %v862_v0, 4  ;;  %v791_v10 = vmax.f32 %v610_v6, 0.0  ;;  %v738_v11 = vpop.f32.mrb[27].mxu1  ;;  %v825_v24 = vmax.f32 %v1190_v5, 0.0  ;;  %v904_v59 = vrot.slane %v903_v47, 2 }
 0x11a   : > { %v823_v13 = vmax.f32 %v738_v11, 0.0  ;;  %v915_v34 = vrot.slane %v914_v3, 4  ;;  %v892_v8 = vadd.f32 %v891_v56, %v890_v43 }
 0x11b   : > { %v864_v14 = vadd.f32 %v863_v7, %v862_v0  ;;  %v869_v16 = vadd.f32 %v791_v10, %v790_v9  ;;  %v905_v2 = vadd.f32 %v904_v59, %v903_v47 }
 0x11c   : > { %v921_v17 = vadd.f32 %v823_v13, %v822_v4  ;;  %v916_v51 = vadd.f32 %v915_v34, %v914_v3  ;;  %v893_v7 = vrot.slane %v892_v8, 1 }
 0x11d   : > { %v865_v18 = vrot.slane %v864_v14, 2  ;;  %v870_v20 = vadd.f32 %v869_v16, %v792_v15  ;;  %v1161_v21 = vpop.f32.mrb[28].mxu0  ;;  %v906_v10 = vrot.slane %v905_v2, 1 }
 0x11e   : > { %v922_v25 = vadd.f32 %v921_v17, %v824_v12  ;;  %v1193_v26 = vpop.f32.mrb[28].mxu1  ;;  %v623_v27 = vpop.f32.mrb[29].mxu0  ;;  %v796_v49 = vmax.f32 %v1161_v21, 0.0  ;;  %v917_v61 = vrot.slane %v916_v51, 2 }
 0x11f   : > { %v866_v29 = vadd.f32 %v865_v18, %v864_v14  ;;  %v794_v30 = vmax.f32 %v623_v27, 0.0  ;;  %v871_v31 = vadd.f32 %v870_v20, %v793_v19  ;;  %v751_v32 = vpop.f32.mrb[29].mxu1  ;;  %v1162_v33 = vpop.f32.mrb[30].mxu0  ;;  %v828_v44 = vmax.f32 %v1193_v26, 0.0 }
 0x120   : > { %v826_v35 = vmax.f32 %v751_v32, 0.0  ;;  %v923_v36 = vadd.f32 %v922_v25, %v825_v24  ;;  %v1194_v37 = vpop.f32.mrb[30].mxu1  ;;  %v626_v38 = vpop.f32.mrb[31].mxu0  ;;  %v797_v54 = vmax.f32 %v1162_v33, 0.0  ;;  %v918_v3 = vadd.f32 %v917_v61, %v916_v51 }
 0x121   : > { %v867_v39 = vrot.slane %v866_v29, 1  ;;  %v872_v40 = vadd.f32 %v871_v31, %v794_v30  ;;  %v795_v41 = vmax.f32 %v626_v38, 0.0  ;;  %v754_v42 = vpop.f32.mrb[31].mxu1  ;;  %v829_v57 = vmax.f32 %v1194_v37, 0.0 }
 0x122   : > { %v924_v45 = vadd.f32 %v923_v36, %v826_v35  ;;  %v827_v46 = vmax.f32 %v754_v42, 0.0  ;;  %v919_v12 = vrot.slane %v918_v3, 1  ;;  %v894_v14 = vadd.f32 %v893_v7, %v892_v8 }
 0x123   : > { %v868_v48 = vadd.f32 %v867_v39, %v866_v29  ;;  %v873_v50 = vadd.f32 %v872_v40, %v795_v41  ;;  %v907_v16 = vadd.f32 %v906_v10, %v905_v2 }
 0x124   : > { %v925_v52 = vadd.f32 %v924_v45, %v827_v46  ;;  %v920_v18 = vadd.f32 %v919_v12, %v918_v3  ;;  %v939_v21 = vmul.f32 0.015625, %v894_v14 }
 0x125   : > { %v937_v53 = vmul.f32 0.015625, %v868_v48  ;;  %v874_v55 = vadd.f32 %v873_v50, %v796_v49  ;;  %v940_v22 = vmul.f32 0.015625, %v907_v16 }
 0x126   : > { %v926_v58 = vadd.f32 %v925_v52, %v828_v44  ;;  %v941_v25 = vmul.f32 0.015625, %v920_v18 }
 0x127   : > { %v954_v23 = vsel %vm953_vm4, %v937_v53, %v952_v63  ;;  %v875_v60 = vadd.f32 %v874_v55, %v797_v54 }
 0x128   : > { %v927_v62 = vadd.f32 %v926_v58, %v829_v57 }
 0x129   : > { %v876_v0 = vrot.slane %v875_v60, 4 }
 0x12a   : > { %v928_v1 = vrot.slane %v927_v62, 4 }
 0x12b   : > { %v877_v4 = vadd.f32 %v876_v0, %v875_v60 }
 0x12c   : > { %v929_v5 = vadd.f32 %v928_v1, %v927_v62 }
 0x12d   : > { %v878_v6 = vrot.slane %v877_v4, 2 }
 0x12e   : > { %v930_v9 = vrot.slane %v929_v5, 2 }
 0x12f   : > { %v879_v11 = vadd.f32 %v878_v6, %v877_v4 }
 0x130   : > { %v931_v13 = vadd.f32 %v930_v9, %v929_v5 }
 0x131   : > { %v880_v63 = vrot.slane %v879_v11, 1 }
 0x132   : > { %v932_v15 = vrot.slane %v931_v13, 1 }
 0x133   : > { %v881_v17 = vadd.f32 %v880_v63, %v879_v11 }
 0x134   : > { %v933_v20 = vadd.f32 %v932_v15, %v931_v13 }
 0x135   : > { %v938_v19 = vmul.f32 0.015625, %v881_v17 }
 0x136   : > { %v942_v27 = vmul.f32 0.015625, %v933_v20 }
 0x137   : > { %v956_v24 = vsel %vm955_vm5, %v938_v19, %v954_v23 }
 0x138   : > { %v958_v26 = vsel %vm957_vm6, %v939_v21, %v956_v24 }
 0x139   : > { %v960_v28 = vsel %vm959_vm7, %v940_v22, %v958_v26 }
 0x13a   : > { %v962_v29 = vsel %vm961_vm8, %v941_v25, %v960_v28 }
 0x13b   : > { %v964_v30 = vsel %vm963_vm9, %v942_v27, %v962_v29 }
 0x13c   : > { %966 = vst [vmem:[%s146_s21] sm:$0xff] %v964_v30 }
 0x13d PF: > { %s12_s9 = sadd.s32 1, %s1244_s9  }
 0x13e   : > { %p9_p5 = scmp.ge.s32.totalorder %s12_s9, 4  }
 0x140   :  { %11 = sbr.rel (!%p9_p5) target bundleno = 1 (0x1), region = 58 }

// kernel: klsanet_forward.5
= control target key start
LH: loop header
LB: loop body
LE: loop exit
PB: predicated region body
PF: predicated region fallthrough
CT: control target
= control target key end

     0   :  { %vm49_vm0 = vcmask 1041408   ;;  %vm307_vm1 = vcmask 1041409   ;;  %vm309_vm2 = vcmask 1042434   ;;  %vm311_vm3 = vcmask 1043459   ;;  %s968_s1 = inlined_call_operand.vmem [shape: f32[16,2,128], index: 1, kind: input, shape index: {}]   ;;  %s969_s0 = inlined_call_operand.vmem [shape: f32[2,6,128], index: 0, kind: input, shape index: {}]   ;;  %s970_s2 = inlined_call_operand.<no memory space> [shape: f32[1], index: 2, kind: input, shape index: {}]   ;;  %s971_s3 = inlined_call_operand.vmem [shape: f32[2,6,8], index: 3, kind: output, shape index: {}]  }
   0x1   :  { %v658_v0 = vld [vmem:[%s968_s1 + $0x10] sm:$0x3]  ;;  %v663_v1 = vld [vmem:[%s968_s1] sm:$0x3]  ;;  %v668_v2 = vld [vmem:[%s968_s1 + $0x12] sm:$0x3] }
   0x2   :  { %v41_v3 = vmul.f32 %v658_v0, %v658_v0  ;;  %v33_v4 = vmul.f32 %v663_v1, %v663_v1  ;;  %v42_v5 = vmul.f32 %v668_v2, %v668_v2  ;;  %v679_v6 = vld [vmem:[%s968_s1 + $0x2] sm:$0x3]  ;;  %v686_v8 = vld [vmem:[%s968_s1 + $0x14] sm:$0x3]  ;;  %v691_v9 = vld [vmem:[%s968_s1 + $0x4] sm:$0x3] }
   0x3   :  { %v34_v7 = vmul.f32 %v679_v6, %v679_v6  ;;  %v43_v14 = vmul.f32 %v686_v8, %v686_v8  ;;  %v35_v15 = vmul.f32 %v691_v9, %v691_v9  ;;  %v704_v16 = vld [vmem:[%s968_s1 + $0x16] sm:$0x3]  ;;  %v709_v17 = vld [vmem:[%s968_s1 + $0x6] sm:$0x3]  ;;  %v720_v22 = vld [vmem:[%s968_s1 + $0x18] sm:$0x3] }
   0x4   :  { %v74_v10 = vsel %vm49_vm0, %v41_v3, 0.0  ;;  %v50_v11 = vsel %vm49_vm0, %v33_v4, 0.0  ;;  %v77_v12 = vsel %vm49_vm0, %v42_v5, 0.0  ;;  %v44_v20 = vmul.f32 %v704_v16, %v704_v16  ;;  %v725_v23 = vld [vmem:[%s968_s1 + $0x8] sm:$0x3] }
   0x5   :  { %75 = vadd.xlane.f32.xlu1 %v74_v10  ;;  %51 = vadd.xlane.f32.xlu0 %v50_v11  ;;  %v53_v13 = vsel %vm49_vm0, %v34_v7, 0.0  ;;  %v80_v18 = vsel %vm49_vm0, %v43_v14, 0.0  ;;  %v56_v19 = vsel %vm49_vm0, %v35_v15, 0.0  ;;  %v36_v21 = vmul.f32 %v709_v17, %v709_v17  ;;  %v736_v28 = vld [vmem:[%s968_s1 + $0x1a] sm:$0x3] }
   0x6   :  { %v83_v24 = vsel %vm49_vm0, %v44_v20, 0.0  ;;  %v45_v26 = vmul.f32 %v720_v22, %v720_v22  ;;  %v37_v27 = vmul.f32 %v725_v23, %v725_v23  ;;  %v741_v29 = vld [vmem:[%s968_s1 + $0xa] sm:$0x3]  ;;  %v46_v32 = vmul.f32 %v736_v28, %v736_v28  ;;  %v752_v34 = vld [vmem:[%s968_s1 + $0x1c] sm:$0x3] }
   0x7   :  { %v59_v25 = vsel %vm49_vm0, %v36_v21, 0.0  ;;  %v38_v33 = vmul.f32 %v741_v29, %v741_v29  ;;  %v757_v35 = vld [vmem:[%s968_s1 + $0xc] sm:$0x3]  ;;  %v47_v38 = vmul.f32 %v752_v34, %v752_v34  ;;  %v768_v40 = vld [vmem:[%s968_s1 + $0x1e] sm:$0x3]  ;;  %vm313_vm4 = vcmask 1044484  }
   0x8   :  { %v86_v30 = vsel %vm49_vm0, %v45_v26, 0.0  ;;  %v62_v31 = vsel %vm49_vm0, %v37_v27, 0.0  ;;  %v89_v36 = vsel %vm49_vm0, %v46_v32, 0.0  ;;  %v39_v39 = vmul.f32 %v757_v35, %v757_v35  ;;  %v773_v41 = vld [vmem:[%s968_s1 + $0xe] sm:$0x3] }
   0x9   :  { %78 = vadd.xlane.f32.xlu1 %v77_v12  ;;  %54 = vadd.xlane.f32.xlu0 %v53_v13  ;;  %v65_v37 = vsel %vm49_vm0, %v38_v33, 0.0  ;;  %v92_v42 = vsel %vm49_vm0, %v47_v38, 0.0  ;;  %v48_v44 = vmul.f32 %v768_v40, %v768_v40  ;;  %v40_v45 = vmul.f32 %v773_v41, %v773_v41 }
   0xa   :  { %v68_v43 = vsel %vm49_vm0, %v39_v39, 0.0  ;;  %vm315_vm5 = vcmask 1045509   ;;  %vm317_vm6 = vcmask 1046534   ;;  %vm319_vm7 = vcmask 1047559  }
   0xb   :  { %v95_v46 = vsel %vm49_vm0, %v48_v44, 0.0  ;;  %v71_v47 = vsel %vm49_vm0, %v40_v45, 0.0  ;;  %vm390_vm8 = vcmask 1045504   ;;  %vm634_vm9 = vmmov 0  }
   0xc   :  { %vm568_vm10 = vcmask 62464  }
   0xd   :  { %81 = vadd.xlane.f32.xlu1 %v80_v18  ;;  %57 = vadd.xlane.f32.xlu0 %v56_v19 }
  0x11   :  { %84 = vadd.xlane.f32.xlu1 %v83_v24  ;;  %60 = vadd.xlane.f32.xlu0 %v59_v25 }
  0x15   :  { %87 = vadd.xlane.f32.xlu1 %v86_v30  ;;  %63 = vadd.xlane.f32.xlu0 %v62_v31 }
  0x19   :  { %90 = vadd.xlane.f32.xlu1 %v89_v36  ;;  %66 = vadd.xlane.f32.xlu0 %v65_v37 }
  0x1d   :  { %93 = vadd.xlane.f32.xlu1 %v92_v42  ;;  %69 = vadd.xlane.f32.xlu0 %v68_v43 }
  0x21   :  { %96 = vadd.xlane.f32.xlu1 %v95_v46  ;;  %72 = vadd.xlane.f32.xlu0 %v71_v47 }
  0x92   :  { %v76_v48 = vpop.xlane.xlu1 %75  ;;  %v52_v49 = vpop.xlane.xlu0 %51 }
  0x93   :  { %593 = vrsqrt.f32 %v76_v48 }
  0x94   :  { %595 = vrsqrt.f32 %v52_v49 }
  0x96   :  { %v79_v50 = vpop.xlane.xlu1 %78  ;;  %v55_v51 = vpop.xlane.xlu0 %54 }
  0x97   :  { %597 = vrsqrt.f32 %v79_v50 }
  0x98   :  { %599 = vrsqrt.f32 %v55_v51 }
  0x9a   :  { %v82_v52 = vpop.xlane.xlu1 %81  ;;  %v58_v53 = vpop.xlane.xlu0 %57 }
  0x9b   :  { %601 = vrsqrt.f32 %v82_v52 }
  0x9c   :  { %603 = vrsqrt.f32 %v58_v53 }
  0x9d   :  { %v594_v54 = vpop.eup %593 }
  0x9e   :  { %v596_v55 = vpop.eup %595  ;;  %v122_v56 = vmin.f32 %v594_v54, 1e+12  ;;  %v85_v57 = vpop.xlane.xlu1 %84 }
  0x9f   :  { %v61_v58 = vpop.xlane.xlu0 %60  ;;  %v114_v59 = vmin.f32 %v596_v55, 1e+12  ;;  %605 = vrsqrt.f32 %v85_v57 }
  0xa0   :  { %607 = vrsqrt.f32 %v61_v58  ;;  %v138_v62 = vmul.f32 %v122_v56, %v658_v0 }
  0xa1   :  { %v598_v60 = vpop.eup %597  ;;  %v130_v63 = vmul.f32 %v114_v59, %v663_v1 }
  0xa2   :  { %v600_v61 = vpop.eup %599  ;;  %v123_v3 = vmin.f32 %v598_v60, 1e+12  ;;  %v88_v4 = vpop.xlane.xlu1 %87  ;;  %v202_v12 = vsel %vm49_vm0, %v138_v62, 0.0 }
  0xa3   :  { %v64_v5 = vpop.xlane.xlu0 %63  ;;  %v115_v7 = vmin.f32 %v600_v61, 1e+12  ;;  %v146_v13 = vsel %vm49_vm0, %v130_v63, 0.0  ;;  %609 = vrsqrt.f32 %v88_v4  ;;  %v203_v20 = vrot.slane %v202_v12, 4 }
  0xa4   :  { %v139_v10 = vmul.f32 %v123_v3, %v668_v2  ;;  %611 = vrsqrt.f32 %v64_v5  ;;  %v147_v21 = vrot.slane %v146_v13, 4 }
  0xa5   :  { %v602_v11 = vpop.eup %601  ;;  %v131_v14 = vmul.f32 %v115_v7, %v679_v6  ;;  %v204_v30 = vadd.f32 %v203_v20, %v202_v12 }
  0xa6   :  { %v91_v15 = vpop.xlane.xlu1 %90  ;;  %v209_v0 = vsel %vm49_vm0, %v139_v10, 0.0  ;;  %v124_v18 = vmin.f32 %v602_v11, 1e+12  ;;  %v604_v19 = vpop.eup %603  ;;  %v148_v31 = vadd.f32 %v147_v21, %v146_v13 }
  0xa7   :  { %v67_v1 = vpop.xlane.xlu0 %66  ;;  %v153_v2 = vsel %vm49_vm0, %v131_v14, 0.0  ;;  %613 = vrsqrt.f32 %v91_v15  ;;  %v210_v26 = vrot.slane %v209_v0, 4  ;;  %v116_v6 = vmin.f32 %v604_v19, 1e+12 }
  0xa8   :  { %615 = vrsqrt.f32 %v67_v1  ;;  %v140_v27 = vmul.f32 %v124_v18, %v686_v8  ;;  %v154_v32 = vrot.slane %v153_v2, 4  ;;  %v205_v44 = vrot.slane %v204_v30, 2 }
  0xa9   :  { %v606_v24 = vpop.eup %605  ;;  %v211_v37 = vadd.f32 %v210_v26, %v209_v0  ;;  %v132_v42 = vmul.f32 %v116_v6, %v691_v9  ;;  %v149_v45 = vrot.slane %v148_v31, 2 }
  0xaa   :  { %v608_v25 = vpop.eup %607  ;;  %v125_v33 = vmin.f32 %v606_v24, 1e+12  ;;  %v216_v39 = vsel %vm49_vm0, %v140_v27, 0.0  ;;  %v155_v46 = vadd.f32 %v154_v32, %v153_v2  ;;  %v206_v55 = vadd.f32 %v205_v44, %v204_v30  ;;  %v94_v58 = vpop.xlane.xlu1 %93 }
  0xab   :  { %v117_v36 = vmin.f32 %v608_v25, 1e+12  ;;  %v212_v48 = vrot.slane %v211_v37, 2  ;;  %v217_v49 = vrot.slane %v216_v39, 4  ;;  %v160_v51 = vsel %vm49_vm0, %v132_v42, 0.0  ;;  %v70_v3 = vpop.xlane.xlu0 %69 }
  0xac   :  { %v141_v47 = vmul.f32 %v125_v33, %v704_v16  ;;  %v150_v56 = vadd.f32 %v149_v45, %v148_v31  ;;  %v156_v57 = vrot.slane %v155_v46, 2  ;;  %v161_v62 = vrot.slane %v160_v51, 4 }
  0xad   :  { %v610_v38 = vpop.eup %609  ;;  %v133_v8 = vmul.f32 %v117_v36, %v709_v17  ;;  %v213_v60 = vadd.f32 %v212_v48, %v211_v37  ;;  %v218_v61 = vadd.f32 %v217_v49, %v216_v39  ;;  %v207_v10 = vrot.slane %v206_v55, 1 }
  0xae   :  { %v612_v43 = vpop.eup %611  ;;  %v126_v52 = vmin.f32 %v610_v38, 1e+12  ;;  %v223_v9 = vsel %vm49_vm0, %v141_v47, 0.0  ;;  %v151_v11 = vrot.slane %v150_v56, 1  ;;  %v157_v12 = vadd.f32 %v156_v57, %v155_v46  ;;  %v97_v19 = vpop.xlane.xlu1 %96 }
  0xaf   :  { %v118_v53 = vmin.f32 %v612_v43, 1e+12  ;;  %v167_v59 = vsel %vm49_vm0, %v133_v8, 0.0  ;;  %v224_v4 = vrot.slane %v223_v9, 4  ;;  %v214_v0 = vrot.slane %v213_v60, 1  ;;  %v73_v6 = vpop.xlane.xlu0 %72 }
  0xb0   :  { %v142_v16 = vmul.f32 %v126_v52, %v720_v22  ;;  %v168_v13 = vrot.slane %v167_v59, 4  ;;  %v219_v18 = vrot.slane %v218_v61, 2  ;;  %v162_v1 = vadd.f32 %v161_v62, %v160_v51 }
  0xb1   :  { %v614_v50 = vpop.eup %613  ;;  %v134_v17 = vmul.f32 %v118_v53, %v725_v23  ;;  %617 = vrsqrt.f32 %v94_v58  ;;  %v225_v20 = vadd.f32 %v224_v4, %v223_v9  ;;  %v208_v2 = vadd.f32 %v207_v10, %v206_v55 }
  0xb2   :  { %v616_v54 = vpop.eup %615  ;;  %v127_v63 = vmin.f32 %v614_v50, 1e+12  ;;  %v230_v5 = vsel %vm49_vm0, %v142_v16, 0.0  ;;  %619 = vrsqrt.f32 %v70_v3  ;;  %v158_v25 = vrot.slane %v157_v12, 1 }
  0xb3   :  { %v119_v7 = vmin.f32 %v616_v54, 1e+12  ;;  %v231_v14 = vrot.slane %v230_v5, 4  ;;  %v174_v15 = vsel %vm49_vm0, %v134_v17, 0.0  ;;  %v169_v30 = vadd.f32 %v168_v13, %v167_v59 }
  0xb4   :  { %v143_v22 = vmul.f32 %v127_v63, %v736_v28  ;;  %v175_v26 = vrot.slane %v174_v15, 4  ;;  %621 = vrsqrt.f32 %v97_v19  ;;  %v215_v32 = vadd.f32 %v214_v0, %v213_v60 }
  0xb5   :  { %v135_v23 = vmul.f32 %v119_v7, %v741_v29  ;;  %v232_v28 = vadd.f32 %v231_v14, %v230_v5  ;;  %v152_v29 = vadd.f32 %v151_v11, %v150_v56  ;;  %v163_v33 = vrot.slane %v162_v1, 2 }
  0xb6   :  { %v237_v21 = vsel %vm49_vm0, %v143_v22, 0.0  ;;  %v220_v36 = vadd.f32 %v219_v18, %v218_v61  ;;  %v226_v37 = vrot.slane %v225_v20, 2  ;;  %623 = vrsqrt.f32 %v73_v6 }
  0xb7   :  { %v181_v24 = vsel %vm49_vm0, %v135_v23, 0.0  ;;  %v238_v27 = vrot.slane %v237_v21, 4  ;;  %v807_v39 = vmul.f32 0.5, %v208_v2  ;;  %v159_v42 = vadd.f32 %v158_v25, %v157_v12 }
  0xb8   :  { %v182_v31 = vrot.slane %v181_v24, 4  ;;  %v176_v43 = vadd.f32 %v175_v26, %v174_v15  ;;  %v170_v44 = vrot.slane %v169_v30, 2  ;;  %v233_v45 = vrot.slane %v232_v28, 2 }
  0xb9   :  { %v239_v38 = vadd.f32 %v238_v27, %v237_v21  ;;  %v809_v47 = vmul.f32 0.5, %v152_v29  ;;  %v811_v8 = vmul.f32 0.5, %v215_v32  ;;  %v164_v48 = vadd.f32 %v163_v33, %v162_v1 }
  0xba   :  { %v183_v46 = vadd.f32 %v182_v31, %v181_v24  ;;  %v221_v49 = vrot.slane %v220_v36, 1  ;;  %v227_v50 = vadd.f32 %v226_v37, %v225_v20  ;;  %v815_v53 = vmul.f32 %v807_v39, %v807_v39 }
  0xbb   :  { %v240_v51 = vrot.slane %v239_v38, 2  ;;  %v618_v52 = vpop.eup %617  ;;  %v817_v54 = vmul.f32 0.5, %v159_v42  ;;  %v177_v55 = vrot.slane %v176_v43, 2  ;;  %v171_v57 = vadd.f32 %v170_v44, %v169_v30 }
  0xbc   :  { %v620_v56 = vpop.eup %619  ;;  %v234_v9 = vadd.f32 %v233_v45, %v232_v28  ;;  %v184_v58 = vrot.slane %v183_v46, 2  ;;  %v128_v59 = vmin.f32 %v618_v52, 1e+12  ;;  %v821_v16 = vmul.f32 %v809_v47, %v809_v47 }
  0xbd   :  { %v825_v17 = vmul.f32 %v811_v8, %v811_v8  ;;  %v165_v60 = vrot.slane %v164_v48, 1  ;;  %v120_v61 = vmin.f32 %v620_v56, 1e+12  ;;  %v222_v63 = vadd.f32 %v221_v49, %v220_v36 }
  0xbe   :  { %v622_v62 = vpop.eup %621  ;;  %v228_v3 = vrot.slane %v227_v50, 1  ;;  %v241_v4 = vadd.f32 %v240_v51, %v239_v38  ;;  %v144_v5 = vmul.f32 %v128_v59, %v752_v34  ;;  %v830_v7 = vmul.f32 %v817_v54, %v817_v54 }
  0xbf   :  { %v178_v10 = vadd.f32 %v177_v55, %v176_v43  ;;  %v136_v11 = vmul.f32 %v120_v61, %v757_v35  ;;  %v129_v12 = vmin.f32 %v622_v62, 1e+12  ;;  %v172_v14 = vrot.slane %v171_v57, 1 }
  0xc0   :  { %v624_v13 = vpop.eup %623  ;;  %v235_v15 = vrot.slane %v234_v9, 1  ;;  %v185_v22 = vadd.f32 %v184_v58, %v183_v46  ;;  %v244_v23 = vsel %vm49_vm0, %v144_v5, 0.0  ;;  %v166_v19 = vadd.f32 %v165_v60, %v164_v48 }
  0xc1   :  { %v245_v0 = vrot.slane %v244_v23, 4  ;;  %v188_v18 = vsel %vm49_vm0, %v136_v11, 0.0  ;;  %v145_v1 = vmul.f32 %v129_v12, %v768_v40  ;;  %v121_v34 = vmin.f32 %v624_v13, 1e+12 }
  0xc2   :  { %v229_v20 = vadd.f32 %v228_v3, %v227_v50  ;;  %v242_v21 = vrot.slane %v241_v4, 1  ;;  %v189_v24 = vrot.slane %v188_v18, 4  ;;  %v179_v2 = vrot.slane %v178_v10, 1 }
  0xc3   :  { %v246_v35 = vadd.f32 %v245_v0, %v244_v23  ;;  %v251_v25 = vsel %vm49_vm0, %v145_v1, 0.0  ;;  %v137_v26 = vmul.f32 %v121_v34, %v773_v41  ;;  %v838_v27 = vmul.f32 0.5, %v222_v63  ;;  %v877_v0 = vld [vmem:[%s969_s0 + $0x8] sm:$0x3f] }
  0xc4   :  { %v186_v6 = vrot.slane %v185_v22, 1  ;;  %v190_v30 = vadd.f32 %v189_v24, %v188_v18  ;;  %v252_v28 = vrot.slane %v251_v25, 4  ;;  %v173_v31 = vadd.f32 %v172_v14, %v171_v57 }
  0xc5   :  { %v236_v40 = vadd.f32 %v235_v15, %v234_v9  ;;  %v247_v29 = vrot.slane %v246_v35, 2  ;;  %v195_v32 = vsel %vm49_vm0, %v137_v26, 0.0  ;;  %v243_v38 = vadd.f32 %v242_v21, %v241_v4 }
  0xc6   :  { %v191_v33 = vrot.slane %v190_v30, 2  ;;  %v253_v36 = vadd.f32 %v252_v28, %v251_v25  ;;  %v196_v37 = vrot.slane %v195_v32, 4  ;;  %v841_v42 = vmul.f32 0.5, %v166_v19 }
  0xc7   :  { %v843_v41 = vmul.f32 0.5, %v229_v20  ;;  %v180_v43 = vadd.f32 %v179_v2, %v178_v10  ;;  %v248_v44 = vadd.f32 %v247_v29, %v246_v35  ;;  %v187_v49 = vadd.f32 %v186_v6, %v185_v22 }
  0xc8   :  { %v192_v45 = vadd.f32 %v191_v33, %v190_v30  ;;  %v254_v46 = vrot.slane %v253_v36, 2  ;;  %v197_v48 = vadd.f32 %v196_v37, %v195_v32  ;;  %v285_v50 = vmul.f32 %v838_v27, %v838_v27 }
  0xc9   :  { %v847_v51 = vmul.f32 0.5, %v173_v31  ;;  %v849_v52 = vmul.f32 0.5, %v236_v40  ;;  %v249_v55 = vrot.slane %v248_v44, 1  ;;  %v851_v9 = vmul.f32 0.5, %v243_v38 }
  0xca   :  { %v198_v56 = vrot.slane %v197_v48, 2  ;;  %v255_v57 = vadd.f32 %v254_v46, %v253_v36  ;;  %v193_v58 = vrot.slane %v192_v45, 1  ;;  %v277_v59 = vmul.f32 %v841_v42, %v841_v42 }
  0xcb   :  { %v855_v60 = vmul.f32 0.5, %v180_v43  ;;  %v250_v61 = vadd.f32 %v249_v55, %v248_v44  ;;  %v286_v62 = vmul.f32 %v843_v41, %v843_v41  ;;  %v859_v5 = vmul.f32 0.5, %v187_v49 }
  0xcc   :  { %v256_v63 = vrot.slane %v255_v57, 1  ;;  %v194_v3 = vadd.f32 %v193_v58, %v192_v45  ;;  %v199_v4 = vadd.f32 %v198_v56, %v197_v48  ;;  %v287_v11 = vmul.f32 %v849_v52, %v849_v52 }
  0xcd   :  { %v861_v10 = vmul.f32 0.5, %v250_v61  ;;  %v321_v12 = vsel %vm307_vm1, %v825_v17, %v815_v53  ;;  %v278_v13 = vmul.f32 %v847_v51, %v847_v51  ;;  %v288_v15 = vmul.f32 %v851_v9, %v851_v9 }
  0xce   :  { %v257_v14 = vadd.f32 %v256_v63, %v255_v57  ;;  %v200_v22 = vrot.slane %v199_v4, 1  ;;  %v872_v23 = vmul.f32 0.5, %v194_v3  ;;  %v322_v53 = vsel %vm309_vm2, %v285_v50, %v321_v12 }
  0xcf   :  { %v289_v18 = vmul.f32 %v861_v10, %v861_v10  ;;  %v279_v17 = vmul.f32 %v855_v60, %v855_v60  ;;  %v308_v1 = vsel %vm307_vm1, %v830_v7, %v821_v16  ;;  %v323_v19 = vsel %vm311_vm3, %v286_v62, %v322_v53  ;;  %v901_v16 = vld [vmem:[%s969_s0] sm:$0x3f] }
  0xd0   :  { %v887_v34 = vmul.f32 0.5, %v257_v14  ;;  %v201_v20 = vadd.f32 %v200_v22, %v199_v4  ;;  %v280_v21 = vmul.f32 %v859_v5, %v859_v5  ;;  %v324_v24 = vsel %vm313_vm4, %v287_v11, %v323_v19 }
  0xd1   :  { %v281_v2 = vmul.f32 %v872_v23, %v872_v23  ;;  %v310_v35 = vsel %vm309_vm2, %v277_v59, %v308_v1  ;;  %v389_v25 = vmul.f32 %v877_v0, %v877_v0  ;;  %v325_v26 = vsel %vm315_vm5, %v288_v15, %v324_v24 }
  0xd2   :  { %v290_v7 = vmul.f32 %v887_v34, %v887_v34  ;;  %v266_v6 = vmul.f32 0.5, %v201_v20  ;;  %v312_v30 = vsel %vm311_vm3, %v278_v13, %v310_v35  ;;  %v326_v28 = vsel %vm317_vm6, %v289_v18, %v325_v26 }
  0xd3   :  { %v314_v31 = vsel %vm313_vm4, %v279_v17, %v312_v30  ;;  %v388_v33 = vmul.f32 %v901_v16, %v901_v16  ;;  %v394_v38 = vsel %vm390_vm8, %v389_v25, 0.0  ;;  %v633_v44 = vmov 0.0  }
  0xd4   :  { %v327_v40 = vsel %vm319_vm7, %v290_v7, %v326_v28  ;;  %v282_v29 = vmul.f32 %v266_v6, %v266_v6  ;;  %v316_v32 = vsel %vm315_vm5, %v280_v21, %v314_v31  ;;  %579 = vmatprep.subr.bf16.mxu0 %v633_v44  ;;  %585 = vmatprep.subr.bf16.mxu1 %v633_v44 }
  0xd5   :  { %332 = vadd.xlane.f32.xlu1 %v327_v40  ;;  %v318_v36 = vsel %vm317_vm6, %v281_v2, %v316_v32  ;;  %v391_v43 = vsel %vm390_vm8, %v388_v33, 0.0  ;;  %581 = vmatprep.mubr.msk.bf16.mxu0 %vm634_vm9, %v633_v44 }
  0xd6   :  { %v320_v37 = vsel %vm319_vm7, %v282_v29, %v318_v36  ;;  %587 = vmatprep.mubr.msk.bf16.mxu1 %vm634_vm9, %v633_v44 }
  0xd7   :  { %330 = vadd.xlane.f32.xlu0 %v320_v37 }
  0xd9   :  { %395 = vadd.xlane.f32.xlu1 %v394_v38 }
  0xdb   :  { %392 = vadd.xlane.f32.xlu0 %v391_v43 }
 0x162   :  { %v333_v45 = vpop.xlane.xlu1 %332 }
 0x163   :  { %625 = vrsqrt.f32 %v333_v45 }
 0x164   :  { %v331_v46 = vpop.xlane.xlu0 %330 }
 0x165   :  { %627 = vrsqrt.f32 %v331_v46 }
 0x166   :  { %v396_v48 = vpop.xlane.xlu1 %395 }
 0x167   :  { %629 = vrsqrt.f32 %v396_v48 }
 0x168   :  { %v393_v50 = vpop.xlane.xlu0 %392 }
 0x169   :  { %631 = vrsqrt.f32 %v393_v50 }
 0x16d   :  { %v626_v49 = vpop.eup %625 }
 0x16e   :  { %v915_v55 = vmin.f32 %v626_v49, 1e+12 }
 0x16f   :  { %v628_v56 = vpop.eup %627 }
 0x170   :  { %v336_v57 = vmin.f32 %v628_v56, 1e+12  ;;  %v347_v58 = vrot.slane %v915_v55, 1  ;;  %v348_v59 = vrot.slane %v915_v55, 2  ;;  %v349_v61 = vrot.slane %v915_v55, 3 }
 0x171   :  { %v350_v62 = vrot.slane %v915_v55, 4  ;;  %v351_v11 = vrot.slane %v915_v55, 5  ;;  %v352_v17 = vrot.slane %v915_v55, 6  ;;  %v353_v31 = vrot.slane %v915_v55, 7 }
 0x172   :  { %v340_v63 = vrot.slane %v336_v57, 1  ;;  %v341_v3 = vrot.slane %v336_v57, 2  ;;  %v342_v4 = vrot.slane %v336_v57, 3  ;;  %v343_v12 = vrot.slane %v336_v57, 4 }
 0x173   :  { %v344_v13 = vrot.slane %v336_v57, 5  ;;  %v345_v14 = vrot.slane %v336_v57, 6  ;;  %v346_v15 = vrot.slane %v336_v57, 7  ;;  %v370_v22 = vmul.f32 %v336_v57, %v809_v47 }
 0x174   :  { %v371_v18 = vmul.f32 %v340_v63, %v817_v54  ;;  %v372_v53 = vmul.f32 %v341_v3, %v841_v42  ;;  %v373_v1 = vmul.f32 %v342_v4, %v847_v51  ;;  %v374_v19 = vmul.f32 %v343_v12, %v855_v60  ;;  %v931_v51 = vpop.eup %629 }
 0x175   :  { %v375_v20 = vmul.f32 %v344_v13, %v859_v5  ;;  %v376_v21 = vmul.f32 %v345_v14, %v872_v23  ;;  %v377_v24 = vmul.f32 %v346_v15, %v266_v6  ;;  %v405_v2 = vpack.c.bf16 %v370_v22, %v370_v22  ;;  %v632_v23 = vpop.eup %631 }
 0x176   :  { %v406_v35 = vpack.c.bf16 %v371_v18, %v371_v18  ;;  %v407_v25 = vpack.c.bf16 %v372_v53, %v372_v53  ;;  %v408_v7 = vpack.c.bf16 %v373_v1, %v373_v1  ;;  %v409_v47 = vpack.c.bf16 %v374_v19, %v374_v19 }
 0x177   :  { %v410_v26 = vpack.c.bf16 %v375_v20, %v375_v20  ;;  %v411_v54 = vpack.c.bf16 %v376_v21, %v376_v21  ;;  %v412_v30 = vpack.c.bf16 %v377_v24, %v377_v24  ;;  %v429_v6 = vunpack.c.l.b16 %v405_v2 }
 0x178   :  { %v430_v42 = vunpack.c.l.b16 %v406_v35  ;;  %v431_v28 = vunpack.c.l.b16 %v407_v25  ;;  %v432_v60 = vunpack.c.l.b16 %v408_v7  ;;  %v433_v40 = vunpack.c.l.b16 %v409_v47 }
 0x179   :  { %v434_v5 = vunpack.c.l.b16 %v410_v26  ;;  %v435_v29 = vunpack.c.l.b16 %v411_v54  ;;  %v436_v32 = vunpack.c.l.b16 %v412_v30  ;;  %v378_v44 = vmul.f32 %v915_v55, %v807_v39 }
 0x17a   :  { %v437_v33 = vrot.slane %v430_v42, 7  ;;  %v439_v36 = vrot.slane %v431_v28, 6  ;;  %v441_v37 = vrot.slane %v432_v60, 5  ;;  %v443_v38 = vrot.slane %v433_v40, 4 }
 0x17b   :  { %v445_v43 = vrot.slane %v434_v5, 3  ;;  %v447_v46 = vrot.slane %v435_v29, 2  ;;  %v379_v48 = vmul.f32 %v347_v58, %v811_v8  ;;  %v380_v49 = vmul.f32 %v348_v59, %v838_v27 }
 0x17c   :  { %v438_v45 = vsel %vm307_vm1, %v437_v33, %v429_v6  ;;  %v381_v56 = vmul.f32 %v349_v61, %v843_v41  ;;  %v382_v57 = vmul.f32 %v350_v62, %v849_v52  ;;  %v383_v63 = vmul.f32 %v351_v11, %v851_v9 }
 0x17d   :  { %v440_v50 = vsel %vm309_vm2, %v439_v36, %v438_v45  ;;  %v449_v4 = vrot.slane %v436_v32, 1  ;;  %v384_v39 = vmul.f32 %v352_v17, %v861_v10  ;;  %v385_v55 = vmul.f32 %v353_v31, %v887_v34 }
 0x17e   :  { %v442_v3 = vsel %vm311_vm3, %v441_v37, %v440_v50  ;;  %v414_v8 = vpack.c.bf16 %v379_v48, %v379_v48  ;;  %v415_v58 = vpack.c.bf16 %v380_v49, %v380_v49  ;;  %v416_v27 = vpack.c.bf16 %v381_v56, %v381_v56 }
 0x17f   :  { %v444_v12 = vsel %vm313_vm4, %v443_v38, %v442_v3  ;;  %v413_v13 = vpack.c.bf16 %v378_v44, %v378_v44  ;;  %v417_v41 = vpack.c.bf16 %v382_v57, %v382_v57  ;;  %v418_v61 = vpack.c.bf16 %v383_v63, %v383_v63 }
 0x180   :  { %v446_v59 = vsel %vm315_vm5, %v445_v43, %v444_v12  ;;  %v399_v52 = vmin.f32 %v632_v23, 1e+12  ;;  %v419_v62 = vpack.c.bf16 %v384_v39, %v384_v39  ;;  %v502_v11 = vunpack.c.l.b16 %v414_v8 }
 0x181   :  { %v448_v9 = vsel %vm317_vm6, %v447_v46, %v446_v59  ;;  %v420_v10 = vpack.c.bf16 %v385_v55, %v385_v55  ;;  %v503_v15 = vunpack.c.l.b16 %v415_v58  ;;  %v504_v34 = vunpack.c.l.b16 %v416_v27 }
 0x182   :  { %v450_v14 = vsel %vm319_vm7, %v449_v4, %v448_v9  ;;  %v505_v18 = vunpack.c.l.b16 %v417_v41  ;;  %v501_v53 = vunpack.c.l.b16 %v413_v13  ;;  %v506_v17 = vunpack.c.l.b16 %v418_v61 }
 0x183   :  { %v451_v22 = vpack.c.b16 %v450_v14, %v450_v14  ;;  %v509_v1 = vrot.slane %v502_v11, 7  ;;  %v511_v19 = vrot.slane %v503_v15, 6  ;;  %v507_v20 = vunpack.c.l.b16 %v419_v62 }
 0x184   :  { %v401_v21 = vmul.f32 %v399_v52, %v901_v16  ;;  %v508_v24 = vunpack.c.l.b16 %v420_v10  ;;  %v513_v35 = vrot.slane %v504_v34, 5  ;;  %v515_v7 = vrot.slane %v505_v18, 4 }
 0x185   :  { %580 = vmatpush3.bf16.xpose.msra.mxu0 %v451_v22  ;;  %v510_v2 = vsel %vm307_vm1, %v509_v1, %v501_v53  ;;  %v517_v26 = vrot.slane %v506_v17, 3  ;;  %v519_v42 = vrot.slane %v507_v20, 2  ;;  %v400_v28 = vmin.f32 %v931_v51, 1e+12 }
 0x186   :  { %v512_v25 = vsel %vm309_vm2, %v511_v19, %v510_v2  ;;  %v403_v54 = vpack.c.bf16 %v401_v21, %v401_v21  ;;  %v521_v60 = vrot.slane %v508_v24, 1  ;;  %v565_v6 = vstv %s970_s2 }
 0x187   :  { %v514_v47 = vsel %vm311_vm3, %v513_v35, %v512_v25  ;;  %v402_v29 = vmul.f32 %v400_v28, %v877_v0 }
 0x188   :  { %v516_v30 = vsel %vm313_vm4, %v515_v7, %v514_v47 }
 0x189   :  { %v518_v31 = vsel %vm315_vm5, %v517_v26, %v516_v30  ;;  %v404_v23 = vpack.c.bf16 %v402_v29, %v402_v29 }
 0x18a   :  { %v520_v16 = vsel %vm317_vm6, %v519_v42, %v518_v31 }
 0x18b   :  { %v522_v40 = vsel %vm319_vm7, %v521_v60, %v520_v16 }
 0x18c   :  { %582 = vmatmul.mubr.bf16.vlgmr.msra.gmra.mrb[0].mxu0 %v403_v54  ;;  %v523_v5 = vpack.c.b16 %v522_v40, %v522_v40 }
 0x18e   :  { %586 = vmatpush3.bf16.xpose.msra.mxu1 %v523_v5 }
 0x195   :  { %588 = vmatmul.mubr.bf16.vlgmr.msra.gmra.mrb[0].mxu1 %v404_v23 }
 0x25f   :  { %v487_v32 = vpop.f32.mrb[0].mxu0 }
 0x260   :  { %v566_v51 = vmul.f32 %v565_v6, %v487_v32  ;;  %v583_v33 = vpop.f32.mrb[1].mxu0 }
 0x261   :  { %v490_v36 = vpop.f32.mrb[2].mxu0 }
 0x262   :  { %569 = vst.msk [vmem:[%s971_s3] sm:$0x3f] %vm568_vm10, %v566_v51  ;;  %v584_v37 = vpop.f32.mrb[3].mxu0 }
 0x268   :  { %v559_v38 = vpop.f32.mrb[0].mxu1 }
 0x269   :  { %v567_v43 = vmul.f32 %v565_v6, %v559_v38  ;;  %v589_v0 = vpop.f32.mrb[1].mxu1 }
 0x26a   :  { %v562_v44 = vpop.f32.mrb[2].mxu1 }
 0x26b   :  { %570 = vst.msk [vmem:[%s971_s3 + $0x8] sm:$0x3f] %vm568_vm10, %v567_v43  ;;  %v590_v45 = vpop.f32.mrb[3].mxu1 }

</bundles_post_ra>
